<compile_context>
chip_gen: v6e
topology: v6e:2x2x1
jax: 0.10.0
libtpu: 0.0.40
codegen_flags: <defaults>
</compile_context>

<pallas_src>
import jax
import jax.numpy as jnp
from jax.experimental import pallas as pl
from jax.experimental.pallas import tpu as pltpu

LANE = 128      # lane width: hidden/output feature dims padded to this
SUBLANE = 8     # sublane width: batch and d_in padded to this
NEG_BIG = -1e30  # padded-logit bias -> exp(..) == 0 exactly in the softmax


def _round_up(x, m):
    return ((x + m - 1) // m) * m


def mlp_softmax_kernel(x_ref, w1_ref, b1_ref, w2_ref, b2_ref, o_ref):
    # Linear1 -> Tanh -> Linear2 -> numerically-stable Softmax, all on one tile.
    x = x_ref[...]
    h = jnp.dot(x, w1_ref[...], preferred_element_type=jnp.float32) + b1_ref[...]
    h = jnp.tanh(h)
    logits = jnp.dot(h, w2_ref[...], preferred_element_type=jnp.float32) + b2_ref[...]
    # Padded output columns carry bias NEG_BIG, so exp(logit - m) == 0 there and
    # they never perturb the max or the denominator.
    m = jnp.max(logits, axis=-1, keepdims=True)
    e = jnp.exp(logits - m)
    denom = jnp.sum(e, axis=-1, keepdims=True)
    o_ref[...] = (e / denom).astype(o_ref.dtype)   # exact division: rows sum to 1


def _pick_batch_tiling(n):
    """Round batch to a sublane multiple, then split into grid steps.

    * >= 2 steps whenever there are >= 16 rows (lets v7x shard across 2 TCs),
    * tile capped at 1024 rows (amortizes ~0.35us/step pipeline overhead),
    * padding waste bounded to < num_steps * 8 rows.
    """
    n_p8 = _round_up(n, SUBLANE)
    max_rows = 1024
    num_steps = max(pl.cdiv(n_p8, max_rows), 2 if n_p8 >= 2 * SUBLANE else 1)
    block_rows = _round_up(pl.cdiv(n_p8, num_steps), SUBLANE)
    num_steps = pl.cdiv(n_p8, block_rows)
    n_p = num_steps * block_rows
    return n_p, block_rows, num_steps


def make_mlp_forward(w1, b1, w2, b2):
    """Pads parameters once and returns a jitted forward(x) closure.

    w1: (d_in, d_h); b1: (d_h,); w2: (d_h, d_out); b2: (d_out,)  [x @ W + b layout]
    """
    d_in, d_h = w1.shape
    d_out = w2.shape[1]

    # d_in only to 8 sublanes (keeps the streamed x read near raw size);
    # d_h / d_out to full 128 lanes so the matmuls and, critically, the output
    # store are lane-dense unmasked ops.
    d_in_p = _round_up(d_in, SUBLANE)
    d_h_p = _round_up(d_h, LANE)
    d_out_p = _round_up(d_out, LANE)

    w1p = jnp.zeros((d_in_p, d_h_p), jnp.float32).at[:d_in, :d_h].set(w1)
    b1p = jnp.zeros((1, d_h_p), jnp.float32).at[0, :d_h].set(b1)
    w2p = jnp.zeros((d_h_p, d_out_p), jnp.float32).at[:d_h, :d_out].set(w2)
    # Padded logit columns get a huge negative bias -> softmax weight exactly 0.
    b2p = jnp.full((1, d_out_p), NEG_BIG, jnp.float32).at[0, :d_out].set(b2)

    @jax.jit
    def forward(x):
        n = x.shape[0]
        n_p, block_rows, num_steps = _pick_batch_tiling(n)

        xp = jnp.zeros((n_p, d_in_p), jnp.float32).at[:n, :d_in].set(
            x.astype(jnp.float32))

        out_p = pl.pallas_call(
            mlp_softmax_kernel,
            out_shape=jax.ShapeDtypeStruct((n_p, d_out_p), jnp.float32),
            grid=(num_steps,),
            in_specs=[
                pl.BlockSpec((block_rows, d_in_p), lambda i: (i, 0)),  # x tile
                pl.BlockSpec((d_in_p, d_h_p), lambda i: (0, 0)),       # W1 (resident)
                pl.BlockSpec((1, d_h_p), lambda i: (0, 0)),            # b1 (resident)
                pl.BlockSpec((d_h_p, d_out_p), lambda i: (0, 0)),      # W2 (resident)
                pl.BlockSpec((1, d_out_p), lambda i: (0, 0)),          # b2 (resident)
            ],
            out_specs=pl.BlockSpec((block_rows, d_out_p), lambda i: (i, 0)),
            compiler_params=pltpu.CompilerParams(
                dimension_semantics=("parallel",),   # shardable across TCs (v7x)
            ),
        )(xp, w1p, b1p, w2p, b2p)

        # Strip batch / feature padding (fused into the same jit dispatch).
        return out_p[:n, :d_out]

    return forward


if __name__ == "__main__":
    # Shapes implied by the module (Iris-like): input_size=4, hidden=16, output=3.
    input_size, hidden_size, output_size = 4, 16, 3
    batch = 32   # >= 16 rows -> exercises the 2-step parallel grid path

    key = jax.random.PRNGKey(0)
    kx, kw1, kb1, kw2, kb2 = jax.random.split(key, 5)

    x = jax.random.normal(kx, (batch, input_size), dtype=jnp.float32)
    # Deterministic synthetic parameters (not a checkpoint load).
    w1 = jax.random.normal(kw1, (input_size, hidden_size), dtype=jnp.float32) * 0.1
    b1 = jax.random.normal(kb1, (hidden_size,), dtype=jnp.float32) * 0.1
    w2 = jax.random.normal(kw2, (hidden_size, output_size), dtype=jnp.float32) * 0.1
    b2 = jax.random.normal(kb2, (output_size,), dtype=jnp.float32) * 0.1

    forward = make_mlp_forward(w1, b1, w2, b2)   # params padded once here
    out = jax.block_until_ready(forward(x))

    # Reference check against plain JAX (same math as the PyTorch forward).
    ref = jax.nn.softmax(jnp.tanh(x @ w1 + b1) @ w2 + b2, axis=1)
    assert out.shape == (batch, output_size), "unexpected output shape"
    assert jnp.allclose(out, ref, atol=1e-3, rtol=1e-3), "mismatch vs reference"
    assert jnp.allclose(jnp.sum(out, axis=1), 1.0, atol=1e-3), "softmax rows != 1"

    print("KERNEL_OK")
</pallas_src>

<mosaic_0001>
module attributes {stable_mosaic.version = 11 : i64} {
  func.func @mlp_softmax_kernel(%arg0: i32, %arg1: memref<16x8xf32, #tpu.memory_space<vmem>>, %arg2: memref<8x128xf32, #tpu.memory_space<vmem>>, %arg3: memref<1x128xf32, #tpu.memory_space<vmem>>, %arg4: memref<128x128xf32, #tpu.memory_space<vmem>>, %arg5: memref<1x128xf32, #tpu.memory_space<vmem>>, %arg6: memref<16x128xf32, #tpu.memory_space<vmem>>) attributes {dimension_semantics = [#tpu.dimension_semantics<parallel>], iteration_bounds = array<i64: 2>, scalar_prefetch = 0 : i64, scratch_operands = 0 : i64, tpu.core_type = #tpu.core_type<tc>, window_params = [{transform_indices = @transform_0, window_bounds = array<i64: 16, 8>}, {pipeline_mode = #tpu.pipeline_mode<synchronous>, transform_indices = @transform_1, window_bounds = array<i64: 8, 128>}, {pipeline_mode = #tpu.pipeline_mode<synchronous>, transform_indices = @transform_2, window_bounds = array<i64: 1, 128>}, {pipeline_mode = #tpu.pipeline_mode<synchronous>, transform_indices = @transform_3, window_bounds = array<i64: 128, 128>}, {pipeline_mode = #tpu.pipeline_mode<synchronous>, transform_indices = @transform_4, window_bounds = array<i64: 1, 128>}, {transform_indices = @transform_5, window_bounds = array<i64: 16, 128>}]} {
    %c0 = arith.constant 0 : index
    %c0_0 = arith.constant 0 : index
    %0 = vector.load %arg1[%c0, %c0_0] : memref<16x8xf32, #tpu.memory_space<vmem>>, vector<16x8xf32>
    %c0_1 = arith.constant 0 : index
    %c0_2 = arith.constant 0 : index
    %1 = vector.load %arg2[%c0_1, %c0_2] : memref<8x128xf32, #tpu.memory_space<vmem>>, vector<8x128xf32>
    %cst = arith.constant dense<0.000000e+00> : vector<16x128xf32>
    %2 = tpu.matmul %0, %1, %cst {dimension_numbers = #tpu.dot_dimension_numbers<[1], [0], [0], [1], [0, 0, 1, 1], [], []>} : vector<16x8xf32>, vector<8x128xf32>, vector<16x128xf32> -> vector<16x128xf32>
    %c0_3 = arith.constant 0 : index
    %c0_4 = arith.constant 0 : index
    %3 = vector.load %arg3[%c0_3, %c0_4] : memref<1x128xf32, #tpu.memory_space<vmem>>, vector<1x128xf32>
    %4 = vector.broadcast %3 : vector<1x128xf32> to vector<16x128xf32>
    %5 = arith.addf %2, %4 : vector<16x128xf32>
    %6 = math.tanh %5 : vector<16x128xf32>
    %c0_5 = arith.constant 0 : index
    %c0_6 = arith.constant 0 : index
    %7 = vector.load %arg4[%c0_5, %c0_6] : memref<128x128xf32, #tpu.memory_space<vmem>>, vector<128x128xf32>
    %cst_7 = arith.constant dense<0.000000e+00> : vector<16x128xf32>
    %8 = tpu.matmul %6, %7, %cst_7 {dimension_numbers = #tpu.dot_dimension_numbers<[1], [0], [0], [1], [0, 0, 1, 1], [], []>} : vector<16x128xf32>, vector<128x128xf32>, vector<16x128xf32> -> vector<16x128xf32>
    %c0_8 = arith.constant 0 : index
    %c0_9 = arith.constant 0 : index
    %9 = vector.load %arg5[%c0_8, %c0_9] : memref<1x128xf32, #tpu.memory_space<vmem>>, vector<1x128xf32>
    %10 = vector.broadcast %9 : vector<1x128xf32> to vector<16x128xf32>
    %11 = arith.addf %8, %10 : vector<16x128xf32>
    %cst_10 = arith.constant dense<0xFF800000> : vector<16xf32>
    %12 = vector.multi_reduction <maximumf>, %11, %cst_10 [1] : vector<16x128xf32> to vector<16xf32>
    %13 = vector.shape_cast %12 : vector<16xf32> to vector<16x1xf32>
    %14 = vector.broadcast %13 : vector<16x1xf32> to vector<16x128xf32>
    %15 = arith.subf %11, %14 : vector<16x128xf32>
    %16 = math.exp %15 : vector<16x128xf32>
    %cst_11 = arith.constant dense<0.000000e+00> : vector<16xf32>
    %17 = vector.multi_reduction <add>, %16, %cst_11 [1] : vector<16x128xf32> to vector<16xf32>
    %18 = vector.shape_cast %17 : vector<16xf32> to vector<16x1xf32>
    %19 = vector.broadcast %18 : vector<16x1xf32> to vector<16x128xf32>
    %20 = arith.divf %16, %19 : vector<16x128xf32>
    %c0_12 = arith.constant 0 : index
    %c0_13 = arith.constant 0 : index
    %21 = vector.load %arg6[%c0_12, %c0_13] : memref<16x128xf32, #tpu.memory_space<vmem>>, vector<16x128xf32>
    tpu.vector_store %arg6[%c0_12, %c0_13], %20 {strides = array<i32>} : memref<16x128xf32, #tpu.memory_space<vmem>>, vector<16x128xf32>,
    return
  }
  func.func @transform_0(%arg0: i32) -> (i32, i32) {
    %c0_i32 = arith.constant 0 : i32
    %c0_i32_0 = arith.constant 0 : i32
    return %arg0, %c0_i32 : i32, i32
  }
  func.func @transform_1(%arg0: i32) -> (i32, i32) {
    %c0_i32 = arith.constant 0 : i32
    %c0_i32_0 = arith.constant 0 : i32
    %c0_i32_1 = arith.constant 0 : i32
    return %c0_i32, %c0_i32_0 : i32, i32
  }
  func.func @transform_2(%arg0: i32) -> (i32, i32) {
    %c0_i32 = arith.constant 0 : i32
    %c0_i32_0 = arith.constant 0 : i32
    %c0_i32_1 = arith.constant 0 : i32
    return %c0_i32, %c0_i32_0 : i32, i32
  }
  func.func @transform_3(%arg0: i32) -> (i32, i32) {
    %c0_i32 = arith.constant 0 : i32
    %c0_i32_0 = arith.constant 0 : i32
    %c0_i32_1 = arith.constant 0 : i32
    return %c0_i32, %c0_i32_0 : i32, i32
  }
  func.func @transform_4(%arg0: i32) -> (i32, i32) {
    %c0_i32 = arith.constant 0 : i32
    %c0_i32_0 = arith.constant 0 : i32
    %c0_i32_1 = arith.constant 0 : i32
    return %c0_i32, %c0_i32_0 : i32, i32
  }
  func.func @transform_5(%arg0: i32) -> (i32, i32) {
    %c0_i32 = arith.constant 0 : i32
    %c0_i32_0 = arith.constant 0 : i32
    return %arg0, %c0_i32 : i32, i32
  }
}

</mosaic_0001>

<bundles_post_ra>
// kernel: forward.1
= control target key start
LH: loop header
LB: loop body
LE: loop exit
PB: predicated region body
PF: predicated region fallthrough
CT: control target
= control target key end

     0   :  { %s630_s18 = smov 0   ;;  %s711_s0 = inlined_call_operand.vmem [shape: f32[32,8], index: 0, kind: input, shape index: {}]   ;;  %s712_s1 = inlined_call_operand.vmem [shape: f32[8,128], index: 1, kind: input, shape index: {}]   ;;  %s713_s2 = inlined_call_operand.vmem [shape: f32[1,128], index: 2, kind: input, shape index: {}]   ;;  %s714_s3 = inlined_call_operand.vmem [shape: f32[128,128], index: 3, kind: input, shape index: {}]   ;;  %s715_s4 = inlined_call_operand.vmem [shape: f32[1,128], index: 4, kind: input, shape index: {}]   ;;  %s716_s5 = inlined_call_operand.vmem [shape: f32[32,128], index: 5, kind: output, shape index: {}]  }
   0x1 LB: > { %s496_s19 = sadd.s32 4294967295, %s598_s18   ;;  %p500_p0 = scmp.ge.s32.totalorder %s598_s18, 1  ;;  %s598_s18 = sphi %s630_s18, %s15_s18  }
   0x2   : > { %p188_p1 = scmp.lt.s32.totalorder %s598_s18, 3 }
   0x4   : > { %p189_p2 = pnand %p500_p0, %p188_p1 }
   0x5   : > { %s501_s22 = sshll.u32 (!%p189_p2), %s496_s19, 1 }
   0x6   : > { %192 = sbr.rel (%p189_p2) target bundleno = 740 (0x2e4), region = 40  ;;  %p217_p3 = scmp.lt.s32.totalorder (!%p189_p2), %s501_s22, 3 }
   0xb   : > { %v230_v0 = vld [vmem:[%s712_s1] sm:$0xff]  ;;  %v337_v1 = vld [vmem:[%s714_s3 + $0x78] sm:$0xff]  ;;  %v336_v2 = vld [vmem:[%s714_s3 + $0x70] sm:$0xff]  ;;  %s718_s22 = smov (!%p217_p3, %s501_s22), 3  ;;  %vm238_vm0 = vcmask 64512  }
   0xc   : > { %532 = vmatprep.subr.mxu0 %v230_v0  ;;  %537 = vmatprep.subr.mxu1 %v337_v1  ;;  %v335_v3 = vld [vmem:[%s714_s3 + $0x68] sm:$0xff]  ;;  %v334_v4 = vld [vmem:[%s714_s3 + $0x60] sm:$0xff]  ;;  %s502_s6 = sshll.u32 %s718_s22, 3  ;;  %v333_v5 = vld [vmem:[%s714_s3 + $0x58] sm:$0xff] }
   0xd   : > { %533 = vmatpush3.msra.mxu0 %v230_v0  ;;  %538 = vmatpush3.msra.mxu1 %v337_v1  ;;  %s220_s9 = scalar_lea.vmem %s711_s0, %s502_s6  ;;  %v332_v8 = vld [vmem:[%s714_s3 + $0x50] sm:$0xff]  ;;  %v331_v9 = vld [vmem:[%s714_s3 + $0x48] sm:$0xff]  ;;  %v330_v10 = vld [vmem:[%s714_s3 + $0x40] sm:$0xff]  ;;  %s226_s19 = scalar_lea.vmem %s716_s5, %s502_s6 }
   0xe   : > { %539 = vmatprep.subr.mxu1 %v336_v2  ;;  %v228_v6 = vld [vmem:[%s220_s9] sm:$0xff]  ;;  %v229_v7 = vld [vmem:[%s220_s9 + $0x8] sm:$0xff]  ;;  %v329_v11 = vld [vmem:[%s714_s3 + $0x38] sm:$0xff] }
   0xf   : > { %540 = vmatpush3.msra.mxu1 %v336_v2  ;;  %534 = vmatprep.mubr.msk.f32.mxu0 %vm238_vm0, %v228_v6  ;;  %v328_v12 = vld [vmem:[%s714_s3 + $0x30] sm:$0xff]  ;;  %v327_v13 = vld [vmem:[%s714_s3 + $0x28] sm:$0xff]  ;;  %v326_v14 = vld [vmem:[%s714_s3 + $0x20] sm:$0xff] }
  0x10   : > { %541 = vmatprep.subr.mxu1 %v335_v3  ;;  %535 = vmatmul.mubr.msk.f32.vlgmr.msra.gmra.mxu0 %vm238_vm0, %v229_v7  ;;  %v325_v15 = vld [vmem:[%s714_s3 + $0x18] sm:$0xff]  ;;  %v324_v16 = vld [vmem:[%s714_s3 + $0x10] sm:$0xff]  ;;  %v323_v17 = vld [vmem:[%s714_s3 + $0x8] sm:$0xff] }
  0x11   : > { %542 = vmatpush3.msra.mxu1 %v335_v3  ;;  %v322_v18 = vld [vmem:[%s714_s3] sm:$0xff] }
  0x12   : > { %543 = vmatprep.subr.mxu1 %v334_v4  ;;  %v505_v19 = vld [vmem:[%s713_s2] ss:$0 sm:$0xff] }
  0x13   : > { %544 = vmatpush3.msra.mxu1 %v334_v4  ;;  %v508_v27 = vld [vmem:[%s715_s4] ss:$0 sm:$0xff] }
  0x14   : > { %545 = vmatprep.subr.mxu1 %v333_v5 }
  0x15   : > { %546 = vmatpush3.msra.mxu1 %v333_v5 }
  0x16   : > { %547 = vmatprep.subr.mxu1 %v332_v8 }
  0x17   : > { %548 = vmatpush3.msra.mxu1 %v332_v8 }
  0x18   : > { %549 = vmatprep.subr.mxu1 %v331_v9 }
  0x19   : > { %550 = vmatpush3.msra.mxu1 %v331_v9 }
  0x1a   : > { %551 = vmatprep.subr.mxu1 %v330_v10 }
  0x1b   : > { %552 = vmatpush3.msra.mxu1 %v330_v10 }
  0x1c   : > { %553 = vmatprep.subr.mxu1 %v329_v11 }
  0x1d   : > { %554 = vmatpush3.msra.mxu1 %v329_v11 }
  0x1e   : > { %555 = vmatprep.subr.mxu1 %v328_v12 }
  0x1f   : > { %556 = vmatpush3.msra.mxu1 %v328_v12 }
  0x20   : > { %557 = vmatprep.subr.mxu1 %v327_v13 }
  0x21   : > { %558 = vmatpush3.msra.mxu1 %v327_v13 }
  0x22   : > { %559 = vmatprep.subr.mxu1 %v326_v14 }
  0x23   : > { %560 = vmatpush3.msra.mxu1 %v326_v14 }
  0x24   : > { %561 = vmatprep.subr.mxu1 %v325_v15 }
  0x25   : > { %562 = vmatpush3.msra.mxu1 %v325_v15 }
  0x26   : > { %563 = vmatprep.subr.mxu1 %v324_v16 }
  0x27   : > { %564 = vmatpush3.msra.mxu1 %v324_v16 }
  0x28   : > { %565 = vmatprep.subr.mxu1 %v323_v17 }
  0x29   : > { %566 = vmatpush3.msra.mxu1 %v323_v17 }
  0x2a   : > { %567 = vmatprep.subr.mxu1 %v322_v18 }
  0x2b   : > { %568 = vmatpush3.msra.mxu1 %v322_v18 }
  0xd0   : > { %v536_v20 = vpop.f32.mrf.mxu0 }
  0xd1   : > { %v317_v21 = vadd.f32 %v536_v20, %v505_v19 }
  0xd2   : > { %v311_v22 = vpop.f32.mrf.mxu0 }
  0xd3   : > { %v312_v23 = vadd.f32 %v505_v19, %v311_v22 }
  0xd5   : > { %580 = vtanh.f32 %v312_v23 }
  0xd6   : > { %582 = vtanh.f32 %v317_v21 }
  0xe2   : > { %v581_v24 = vpop.eup %580 }
  0xe3   : > { %v583_v25 = vpop.eup %582  ;;  %569 = vmatprep.mubr.f32.mxu1 %v581_v24 }
  0xe4   : > { %570 = vmatmul.mubr.f32.vlgmr.msra.gmra.mxu1 %v583_v25 }
 0x1a4   : > { %v571_v26 = vpop.f32.mrf.mxu1 }
 0x1a5   : > { %v417_v30 = vadd.f32 %v571_v26, %v508_v27 }
 0x1a6   : > { %v411_v28 = vpop.f32.mrf.mxu1 }
 0x1a7   : > { %v412_v29 = vadd.f32 %v508_v27, %v411_v28 }
 0x1a9   : > { %420 = vmax.xlane.f32.xlu0 %v412_v29 }
 0x1ad   : > { %422 = vmax.xlane.f32.xlu0 %v417_v30 }
 0x232   : > { %v421_v31 = vpop.xlane.xlu0 %420 }
 0x233   : > { %v424_v32 = vsub.f32 %v412_v29, %v421_v31 }
 0x235   : > { %v426_v33 = vmul.f32 1.442695, %v424_v32 }
 0x236   : > { %v423_v34 = vpop.xlane.xlu0 %422 }
 0x237   : > { %584 = vpow2.f32 %v426_v33  ;;  %v425_v35 = vsub.f32 %v417_v30, %v423_v34 }
 0x239   : > { %v428_v36 = vmul.f32 1.442695, %v425_v35 }
 0x23b   : > { %586 = vpow2.f32 %v428_v36 }
 0x244   : > { %v585_v37 = vpop.eup %584 }
 0x245   : > { %430 = vadd.xlane.f32.xlu1 %v585_v37 }
 0x248   : > { %v587_v38 = vpop.eup %586 }
 0x249   : > { %432 = vadd.xlane.f32.xlu1 %v587_v38 }
 0x2ce   : > { %v431_v39 = vpop.xlane.xlu1 %430 }
 0x2cf   : > { %588 = vrcp.f32 %v431_v39 }
 0x2d2   : > { %v433_v40 = vpop.xlane.xlu1 %432 }
 0x2d3   : > { %590 = vrcp.f32 %v433_v40 }
 0x2dc   : > { %v589_v41 = vpop.eup %588 }
 0x2dd   : > { %v435_v42 = vmul.f32 %v589_v41, %v585_v37 }
 0x2df   : > { %438 = vst [vmem:[%s226_s19] sm:$0xff] %v435_v42 }
 0x2e0   : > { %v591_v43 = vpop.eup %590 }
 0x2e1   : > { %v437_v44 = vmul.f32 %v591_v43, %v587_v38 }
 0x2e3   : > { %439 = vst [vmem:[%s226_s19 + $0x8] sm:$0xff] %v437_v44 }
 0x2e4 PF: > { %s15_s18 = sadd.s32 1, %s598_s18  }
 0x2e5   : > { %p12_p4 = scmp.ge.s32.totalorder %s15_s18, 4  }
 0x2e7   :  { %14 = sbr.rel (!%p12_p4) target bundleno = 1 (0x1), region = 70 }

</bundles_post_ra>
